<compile_context>
chip_gen: v7x
topology: tpu7x:2x2x1
jax: 0.10.0
libtpu: 0.0.40
codegen_flags: <defaults>
</compile_context>

<pallas_src>
import functools

import jax
import jax.numpy as jnp
from jax.experimental import pallas as pl
from jax.experimental.pallas import tpu as pltpu

GAMMA = 1.5
ALPHA = 0.25
LANE = 128
SUBLANE = 8
MAX_TILE_ROWS = 2048   # (2048, 128) f32 block = 1 MiB; x2 inputs x2 buffers = 4 MiB
N_CORES = 2            # per-core partial sums; wasted blocks are masked on 1-TC chips


def _round_up(v, m):
    return ((v + m - 1) // m) * m


def _qfocal_kernel(pred_ref, true_ref, out_ref, acc_ref, *,
                   gamma, alpha, tile_rows, n_inner, rows_valid):
    j = pl.program_id(1)

    @pl.when(j == 0)
    def _():
        acc_ref[...] = jnp.zeros_like(acc_ref)

    x = pred_ref[...].astype(jnp.float32)
    y = true_ref[...].astype(jnp.float32)

    # Numerically-stable BCE-with-logits (matches torch.nn.BCEWithLogitsLoss):
    #   max(x, 0) - x*y + log(1 + exp(-|x|))
    e = jnp.exp(-jnp.abs(x))                       # shared by BCE and sigmoid
    bce = jnp.maximum(x, 0.0) - x * y + jnp.log1p(e)

    # sigmoid(x) from the already-computed e:
    #   x >= 0: 1/(1+e)      x < 0: e/(1+e)
    inv = pl.reciprocal(1.0 + e, approx=True)      # single EUP vrcp push
    p = jnp.where(x >= 0.0, inv, e * inv)

    # alpha_factor = y*alpha + (1-y)*(1-alpha)  folded into one FMA
    alpha_factor = (1.0 - alpha) + y * (2.0 * alpha - 1.0)

    d = jnp.abs(y - p)
    if float(gamma) == 1.5:
        mod = d * jnp.sqrt(d)                      # |d|**1.5 without log/exp
    elif float(gamma) == 2.0:
        mod = d * d
    elif float(gamma) == 1.0:
        mod = d
    else:
        mod = jnp.where(d > 0.0, d ** gamma, 0.0)  # guard pow(0, gamma)

    loss = bce * alpha_factor * mod

    # Row mask: zero contributions from rows past the logical end.  This covers
    # (a) the partial trailing block when rows % tile_rows != 0 and (b) blocks
    # whose index_map was clamped onto the last block (fully out of range).
    b = pl.program_id(0) * n_inner + j             # unclamped logical block id
    row_ids = b * tile_rows + jax.lax.broadcasted_iota(
        jnp.int32, (tile_rows, LANE), 0)
    loss = jnp.where(row_ids < rows_valid, loss, 0.0)

    # Tree-reduce across vregs (pure VALU) into a small (8, LANE) accumulator.
    acc_ref[...] += jnp.sum(
        loss.reshape(tile_rows // SUBLANE, SUBLANE, LANE), axis=0)

    @pl.when(j == pl.num_programs(1) - 1)
    def _():
        out_ref[...] = jnp.sum(acc_ref[...], axis=0,
                               keepdims=True).reshape(1, 1, LANE)


def qfocal_loss(pred, true, gamma=GAMMA, alpha=ALPHA):
    """QFocalLoss forward with reduction='mean' (BCEWithLogitsLoss default)."""
    assert pred.shape == true.shape
    total = pred.size

    x = pred.reshape(-1)   # contiguous reshape: free (bitcast) in XLA
    y = true.reshape(-1)

    rem = total % LANE
    if rem:
        # Rare ragged case only (total not a multiple of 128): pad to the next
        # lane multiple with (pred=0, true=0.5) which contributes exactly zero
        # loss (|0.5 - sigmoid(0)| = 0).  The common tile-misalignment case is
        # handled by the in-kernel row mask with zero extra HBM traffic.
        pad = LANE - rem
        x = jnp.pad(x, (0, pad), constant_values=0.0)
        y = jnp.pad(y, (0, pad), constant_values=0.5)

    rows = pl.cdiv(total, LANE)
    x2 = x.reshape(rows, LANE)
    y2 = y.reshape(rows, LANE)

    tile_rows = min(MAX_TILE_ROWS,
                    _round_up(max(pl.cdiv(rows, N_CORES), 1), SUBLANE))
    blocks_total = pl.cdiv(rows, tile_rows)
    n_inner = pl.cdiv(blocks_total, N_CORES)
    last_block = blocks_total - 1

    kernel = functools.partial(
        _qfocal_kernel, gamma=float(gamma), alpha=float(alpha),
        tile_rows=tile_rows, n_inner=n_inner, rows_valid=rows)

    def in_map(c, j):
        # Clamp so every issued DMA overlaps the array; clamped (duplicate)
        # blocks are fully zeroed by the in-kernel row mask.
        return (jnp.minimum(c * n_inner + j, last_block), 0)

    partials = pl.pallas_call(
        kernel,
        out_shape=jax.ShapeDtypeStruct((N_CORES, 1, LANE), jnp.float32),
        grid_spec=pltpu.PrefetchScalarGridSpec(
            num_scalar_prefetch=0,
            grid=(N_CORES, n_inner),
            in_specs=[
                pl.BlockSpec((tile_rows, LANE), in_map),
                pl.BlockSpec((tile_rows, LANE), in_map),
            ],
            out_specs=pl.BlockSpec((1, 1, LANE), lambda c, j: (c, 0, 0)),
            scratch_shapes=[pltpu.VMEM((SUBLANE, LANE), jnp.float32)],
        ),
        compiler_params=pltpu.CompilerParams(
            dimension_semantics=("parallel", "arbitrary")),
        cost_estimate=pl.CostEstimate(
            flops=14 * total,
            transcendentals=4 * total,          # exp, log1p, recip, sqrt
            bytes_accessed=2 * total * pred.dtype.itemsize + N_CORES * LANE * 4),
    )(x2, y2)

    return jnp.sum(partials) / jnp.float32(total)


def qfocal_loss_ref(pred, true, gamma=GAMMA, alpha=ALPHA):
    x = pred.astype(jnp.float32)
    y = true.astype(jnp.float32)
    bce = jnp.maximum(x, 0.0) - x * y + jnp.log1p(jnp.exp(-jnp.abs(x)))
    p = jax.nn.sigmoid(x)
    loss = bce * (y * alpha + (1 - y) * (1 - alpha)) * jnp.abs(y - p) ** gamma
    return loss.mean()


if __name__ == "__main__":
    key = jax.random.PRNGKey(0)
    k1, k2 = jax.random.split(key)
    # NCHW: batch=2, channels=4, spatial=16x16  -> 2048 elements
    shape = (2, 4, 16, 16)
    pred = jax.random.normal(k1, shape, dtype=jnp.float32)    # logits
    true = jax.random.uniform(k2, shape, dtype=jnp.float32)   # soft targets in [0,1]

    out = qfocal_loss(pred, true)
    out = jax.block_until_ready(out)

    ref = qfocal_loss_ref(pred, true)
    # Tolerance loosened slightly vs. exact math because the kernel uses the
    # approximate EUP reciprocal for the sigmoid denominator (~1e-4 rel on p).
    assert jnp.allclose(out, ref, rtol=1e-2, atol=1e-6), (out, ref)
    print("KERNEL_OK")
</pallas_src>

<mosaic_0001>
module attributes {stable_mosaic.version = 11 : i64} {
  func.func @_qfocal_kernel(%arg0: i32, %arg1: i32, %arg2: memref<8x128xf32, #tpu.memory_space<vmem>>, %arg3: memref<8x128xf32, #tpu.memory_space<vmem>>, %arg4: memref<1x1x128xf32, #tpu.memory_space<vmem>>, %arg5: memref<8x128xf32, #tpu.memory_space<vmem>>) attributes {dimension_semantics = [#tpu.dimension_semantics<parallel>, #tpu.dimension_semantics<arbitrary>], iteration_bounds = array<i64: 2, 1>, scalar_prefetch = 0 : i64, scratch_operands = 1 : i64, tpu.core_type = #tpu.core_type<tc>, window_params = [{transform_indices = @transform_0, window_bounds = array<i64: 8, 128>}, {transform_indices = @transform_1, window_bounds = array<i64: 8, 128>}, {transform_indices = @transform_2, window_bounds = array<i64: 1, 1, 128>}]} {
    %c0_i32 = arith.constant 0 : i32
    %0 = arith.cmpi eq, %arg1, %c0_i32 : i32
    %1 = arith.extui %0 : i1 to i32
    %c0_i32_0 = arith.constant 0 : i32
    %2 = arith.cmpi ne, %1, %c0_i32_0 : i32
    scf.if %2 {
      %cst_17 = arith.constant 0.000000e+00 : f32
      %50 = vector.broadcast %cst_17 : f32 to vector<8x128xf32>
      %c0_18 = arith.constant 0 : index
      %c0_19 = arith.constant 0 : index
      %51 = vector.load %arg5[%c0_18, %c0_19] : memref<8x128xf32, #tpu.memory_space<vmem>>, vector<8x128xf32>
      tpu.vector_store %arg5[%c0_18, %c0_19], %50 {strides = array<i32>} : memref<8x128xf32, #tpu.memory_space<vmem>>, vector<8x128xf32>,
    } else {
    }
    %c0 = arith.constant 0 : index
    %c0_1 = arith.constant 0 : index
    %3 = vector.load %arg2[%c0, %c0_1] : memref<8x128xf32, #tpu.memory_space<vmem>>, vector<8x128xf32>
    %c0_2 = arith.constant 0 : index
    %c0_3 = arith.constant 0 : index
    %4 = vector.load %arg3[%c0_2, %c0_3] : memref<8x128xf32, #tpu.memory_space<vmem>>, vector<8x128xf32>
    %5 = math.absf %3 : vector<8x128xf32>
    %cst = arith.constant 0.000000e+00 : f32
    %6 = vector.broadcast %cst : f32 to vector<8x128xf32>
    %7 = arith.subf %6, %5 : vector<8x128xf32>
    %8 = math.exp %7 : vector<8x128xf32>
    %cst_4 = arith.constant 0.000000e+00 : f32
    %9 = vector.broadcast %cst_4 : f32 to vector<8x128xf32>
    %10 = arith.maximumf %3, %9 : vector<8x128xf32>
    %11 = arith.mulf %3, %4 : vector<8x128xf32>
    %12 = arith.subf %10, %11 : vector<8x128xf32>
    %13 = math.log1p %8 : vector<8x128xf32>
    %14 = arith.addf %12, %13 : vector<8x128xf32>
    %cst_5 = arith.constant 1.000000e+00 : f32
    %15 = vector.broadcast %cst_5 : f32 to vector<8x128xf32>
    %16 = arith.addf %15, %8 : vector<8x128xf32>
    %17 = tpu.reciprocal %16 {approx = true} : vector<8x128xf32> -> vector<8x128xf32>
    %cst_6 = arith.constant 0.000000e+00 : f32
    %18 = vector.broadcast %cst_6 : f32 to vector<8x128xf32>
    %19 = arith.cmpf oge, %3, %18 : vector<8x128xf32>
    %20 = arith.mulf %8, %17 : vector<8x128xf32>
    %21 = arith.select %19, %17, %20 : vector<8x128xi1>, vector<8x128xf32>
    %cst_7 = arith.constant -5.000000e-01 : f32
    %22 = vector.broadcast %cst_7 : f32 to vector<8x128xf32>
    %23 = arith.mulf %4, %22 : vector<8x128xf32>
    %cst_8 = arith.constant 7.500000e-01 : f32
    %24 = vector.broadcast %cst_8 : f32 to vector<8x128xf32>
    %25 = arith.addf %24, %23 : vector<8x128xf32>
    %26 = arith.subf %4, %21 : vector<8x128xf32>
    %27 = math.absf %26 : vector<8x128xf32>
    %28 = math.sqrt %27 : vector<8x128xf32>
    %29 = arith.mulf %27, %28 : vector<8x128xf32>
    %30 = arith.mulf %14, %25 : vector<8x128xf32>
    %31 = arith.mulf %30, %29 : vector<8x128xf32>
    %c1_i32 = arith.constant 1 : i32
    %32 = arith.muli %arg0, %c1_i32 : i32
    %33 = arith.addi %32, %arg1 : i32
    %c8_i32 = arith.constant 8 : i32
    %34 = arith.muli %33, %c8_i32 : i32
    %35 = tpu.iota {dimensions = array<i32: 0>} : vector<8x128xi32>
    %36 = vector.broadcast %34 : i32 to vector<8x128xi32>
    %37 = arith.addi %36, %35 : vector<8x128xi32>
    %c16_i32 = arith.constant 16 : i32
    %38 = vector.broadcast %c16_i32 : i32 to vector<8x128xi32>
    %39 = arith.cmpi slt, %37, %38 : vector<8x128xi32>
    %cst_9 = arith.constant 0.000000e+00 : f32
    %40 = vector.broadcast %cst_9 : f32 to vector<8x128xf32>
    %41 = arith.select %39, %31, %40 : vector<8x128xi1>, vector<8x128xf32>
    %c0_10 = arith.constant 0 : index
    %c0_11 = arith.constant 0 : index
    %42 = vector.load %arg5[%c0_10, %c0_11] : memref<8x128xf32, #tpu.memory_space<vmem>>, vector<8x128xf32>
    %43 = vector.shape_cast %41 : vector<8x128xf32> to vector<1x8x128xf32>
    %cst_12 = arith.constant dense<0.000000e+00> : vector<8x128xf32>
    %44 = vector.multi_reduction <add>, %43, %cst_12 [0] : vector<1x8x128xf32> to vector<8x128xf32>
    %45 = arith.addf %42, %44 : vector<8x128xf32>
    %c0_13 = arith.constant 0 : index
    %c0_14 = arith.constant 0 : index
    %46 = vector.load %arg5[%c0_13, %c0_14] : memref<8x128xf32, #tpu.memory_space<vmem>>, vector<8x128xf32>
    tpu.vector_store %arg5[%c0_13, %c0_14], %45 {strides = array<i32>} : memref<8x128xf32, #tpu.memory_space<vmem>>, vector<8x128xf32>,
    %c0_i32_15 = arith.constant 0 : i32
    %47 = arith.cmpi eq, %arg1, %c0_i32_15 : i32
    %48 = arith.extui %47 : i1 to i32
    %c0_i32_16 = arith.constant 0 : i32
    %49 = arith.cmpi ne, %48, %c0_i32_16 : i32
    scf.if %49 {
      %c0_17 = arith.constant 0 : index
      %c0_18 = arith.constant 0 : index
      %50 = vector.load %arg5[%c0_17, %c0_18] : memref<8x128xf32, #tpu.memory_space<vmem>>, vector<8x128xf32>
      %cst_19 = arith.constant dense<0.000000e+00> : vector<128xf32>
      %51 = vector.multi_reduction <add>, %50, %cst_19 [0] : vector<8x128xf32> to vector<128xf32>
      %52 = vector.shape_cast %51 : vector<128xf32> to vector<1x128xf32>
      %53 = vector.shape_cast %52 : vector<1x128xf32> to vector<1x1x128xf32>
      %c0_20 = arith.constant 0 : index
      %c0_21 = arith.constant 0 : index
      %c0_22 = arith.constant 0 : index
      %54 = vector.load %arg4[%c0_20, %c0_21, %c0_22] : memref<1x1x128xf32, #tpu.memory_space<vmem>>, vector<1x1x128xf32>
      tpu.vector_store %arg4[%c0_20, %c0_21, %c0_22], %53 {strides = array<i32>} : memref<1x1x128xf32, #tpu.memory_space<vmem>>, vector<1x1x128xf32>,
    } else {
    }
    return
  }
  func.func @transform_0(%arg0: i32, %arg1: i32) -> (i32, i32) {
    %c1_i32 = arith.constant 1 : i32
    %0 = arith.muli %arg0, %c1_i32 : i32
    %1 = arith.addi %0, %arg1 : i32
    %c1_i32_0 = arith.constant 1 : i32
    %2 = arith.minsi %1, %c1_i32_0 : i32
    %c0_i32 = arith.constant 0 : i32
    %c0_i32_1 = arith.constant 0 : i32
    return %2, %c0_i32 : i32, i32
  }
  func.func @transform_1(%arg0: i32, %arg1: i32) -> (i32, i32) {
    %c1_i32 = arith.constant 1 : i32
    %0 = arith.muli %arg0, %c1_i32 : i32
    %1 = arith.addi %0, %arg1 : i32
    %c1_i32_0 = arith.constant 1 : i32
    %2 = arith.minsi %1, %c1_i32_0 : i32
    %c0_i32 = arith.constant 0 : i32
    %c0_i32_1 = arith.constant 0 : i32
    return %2, %c0_i32 : i32, i32
  }
  func.func @transform_2(%arg0: i32, %arg1: i32) -> (i32, i32, i32) {
    %c0_i32 = arith.constant 0 : i32
    %c0_i32_0 = arith.constant 0 : i32
    %c0_i32_1 = arith.constant 0 : i32
    return %arg0, %c0_i32, %c0_i32_0 : i32, i32, i32
  }
}

</mosaic_0001>

<bundles_post_ra>
// kernel: tpu_custom_call.1
= control target key start
LH: loop header
LB: loop body
LE: loop exit
PB: predicated region body
PF: predicated region fallthrough
CT: control target
= control target key end

     0   :  { %7 = vsyncpa [#allocation4], 0  ;;  %s963_s0 = inlined_call_operand.hbm [shape: f32[16,128], index: 0, kind: input, shape index: {}]   ;;  %s964_s1 = inlined_call_operand.hbm [shape: f32[16,128], index: 1, kind: input, shape index: {}]   ;;  %s965_s2 = inlined_call_operand.hbm [shape: f32[2,1,128], index: 2, kind: output, shape index: {}]  }
   0x1   :  { %9 = vsyncpa [#allocation4 + $0x1], 0 }
   0x2   :  { %10 = vsyncpa [#allocation7], 0 }
   0x3   :  { %12 = vsyncpa [#allocation7 + $0x1], 0 }
   0x4   :  { %13 = vsyncpa [#allocation5], 0 }
   0x5   :  { %15 = vsyncpa [#allocation5 + $0x1], 0  ;;  %s711_s9 = smov 0   ;;  %s713_s10 = smov 0  }
   0x6   :  { %s715_s11 = smov 0   ;;  %s717_s12 = smov 0  }
   0x7   :  { %s719_s13 = smov 0   ;;  %s721_s14 = smov 0  }
   0x8   :  { %s723_s15 = smov 0   ;;  %s725_s16 = smov 0  }
   0x9   :  { %s727_s17 = smov 0  }
   0xa LB: > { %s407_s18 = sadd.s32 4294967295, %s691_s17   ;;  %s408_s19 = sadd.s32 4294967294, %s691_s17   ;;  %s691_s17 = sphi %s727_s17, %s21_s17   ;;  %s687_s16 = sphi %s725_s16, %s990_s16   ;;  %s683_s15 = sphi %s723_s15, %s989_s15   ;;  %s679_s14 = sphi %s721_s14, %s988_s14   ;;  %s675_s13 = sphi %s719_s13, %s987_s13   ;;  %s671_s12 = sphi %s717_s12, %s986_s12   ;;  %s667_s11 = sphi %s715_s11, %s985_s11   ;;  %s663_s10 = sphi %s713_s10, %s984_s10   ;;  %s659_s9 = sphi %s711_s9, %s983_s9  }
   0xb   : > { %s33_s20 = sadd.s32 1, %s687_s16  ;;  %p38_p0 = scmp.lt.s32.totalorder %s687_s16, 1 }
   0xc   : > { %p35_p1 = scmp.ge.s32.totalorder %s33_s20, 2  ;;  %s46_s21 = sadd.s32 1, %s679_s14 }
   0xd   : > { %s760_s22 = scalar_select %p38_p0, %s687_s16, 1 }
   0xe   : > { %s992_s20 = smov (%p35_p1, %s33_s20), 0  ;;  %p53_p2 = scmp.ne.s32.totalorder %s679_s14, %s675_s13 }
   0xf   : > { %p54_p3 = scmp.eq.s32.totalorder %s691_s17, 0  ;;  %p41_p4 = scmp.lt.s32.totalorder %s992_s20, 1 }
  0x10   : > { %p59_p5 = scmp.ne.s32.totalorder %s675_s13, %s671_s12  ;;  %p60_p7 = scmp.eq.s32.totalorder %s407_s18, 0 }
  0x11   : > { %p769_p6 = por %p54_p3, %p53_p2  ;;  %s101_s26 = ssub.s32 %s687_s16, %s992_s20 }
  0x12   : > { %s42_s24 = scalar_select %p41_p4, %s992_s20, 1 }
  0x13   : > { %p774_p8 = por %p60_p7, %p59_p5  ;;  %p102_p9 = scmp.eq.s32.totalorder %s101_s26, 0 }
  0x14   : > { %s43_s27 = ssub.s32 %s760_s22, %s42_s24  ;;  %s104_s28 = sadd.s32 1, %s667_s11 }
  0x15   : > { %s970_s25 = scalar_select %p774_p8, 1, 0 }
  0x16   : > { %p44_p10 = scmp.eq.s32.totalorder %s43_s27, 0  ;;  %p114_p11 = scmp.ne.s32.totalorder %s667_s11, %s663_s10 }
  0x17   : > { %s783_s29 = scalar_select %p102_p9, %s667_s11, %s104_s28  }
  0x18   : > { %s786_s30 = scalar_select %p44_p10, %s679_s14, %s46_s21  }
  0x19   : > { %p115_p12 = scmp.eq.s32.totalorder %s407_s18, 1  ;;  %p120_p13 = scmp.ne.s32.totalorder %s663_s10, %s659_s9 }
  0x1a   : > { %p121_p0 = scmp.eq.s32.totalorder %s408_s19, 1  ;;  %p439_p4 = scmp.lt.s32.totalorder %s691_s17, 2 }
  0x1b   : > { %p792_p1 = por %p115_p12, %p114_p11  ;;  %s803_s5 = sand.u32 1, %s679_s14  }
  0x1c   : > { %p797_p3 = por %p121_p0, %p120_p13  ;;  %s412_s6 = sshll.u32 %s760_s22, 7 }
  0x1d   : > { %s971_s3 = scalar_select %p792_p1, 1, 0 }
  0x1e   : > { %s972_s4 = scalar_select %p797_p3, 1, 0 }
  0x1f   : > { %s966_s7 = sshll.u32 %s803_s5, 3  ;;  %s812_s18 = scalar_lea.hbm %s963_s0, %s412_s6 }
  0x20   : > { %s145_s19 = scalar_lea.vmem [#allocation3], %s966_s7  ;;  %p818_p5 = pnand %p439_p4, %p769_p6 }
  0x21   : > { %s155_s21 = sshll.u32 %s145_s19, 4  ;;  %s142_s26 = scalar_lea.sflag [#allocation4], %s803_s5  ;;  %s822_s21 = int_to_ptr.vmem [resolvable:$true] %s155_s21 }
  0x22   : > { %s521_s27 = scalar_lea.hbm %s812_s18, 128  ;;  %p523_p11 = pneg %p818_p5 }
  0x23   : > { %p522_p10 = scmp.ne.s32.totalorder %s812_s18, %s521_s27  ;;  %s526_s8 = scalar_lea.hbm %s963_s0, 256 }
  0x24   : > { %p527_p6 = scmp.lt.u32.totalorder %s812_s18, %s963_s0  ;;  %p528_p0 = scmp.lt.u32.totalorder %s526_s8, %s521_s27 }
  0x25   : > { %p524_p12 = pnand %p523_p11, %p522_p10  ;;  %p530_p2 = scmp.lt.u32.totalorder %s521_s27, %s812_s18 }
  0x26   : > { %p529_p4 = por %p528_p0, %p527_p6 }
  0x27   : > { %p525_p13 = pneg %p524_p12 }
  0x28   : > { %p531_p7 = por %p530_p2, %p529_p4 }
  0x2a   : > { %p532_p9 = pnand %p531_p7, %p525_p13 }
  0x2c   : > { %535 = shalt.err (!%p532_p9)
}
  0x2d   : > { %s536_s7 = scalar_lea.vmem %s822_s21, 128  ;;  %s693_s23 = smov [#allocation3]  }
  0x2e   : > { %p537_p10 = scmp.ne.s32.totalorder %s822_s21, %s536_s7  ;;  %s541_s28 = sshll.u32 %s693_s23, 4  ;;  %s542_s28 = int_to_ptr.vmem [resolvable:$false] %s541_s28 }
  0x2f   : > { %s543_s12 = scalar_lea.vmem %s542_s28, 256  ;;  %p544_p1 = scmp.lt.s32.totalorder %s822_s21, %s542_s28 }
  0x30   : > { %p539_p12 = pnand %p537_p10, %p523_p11  ;;  %p545_p6 = scmp.lt.s32.totalorder %s543_s12, %s536_s7 }
  0x32   : > { %p540_p3 = pneg %p539_p12  ;;  %p546_p0 = por %p545_p6, %p544_p1 }
  0x34   : > { %p547_p2 = pnand %p546_p0, %p540_p3 }
  0x36   : > { %550 = shalt.err (!%p547_p2)
}
  0x37   : > { %431 = dma.hbm_to_vmem [thread:$0]  (!%p818_p5), %s812_s18, 128, %s822_s21, %s142_s26  }
  0x38   : > { %p974_p7 = scmp.lt.s32.totalorder %s691_s17, 3  ;;  %p975_p9 = scmp.ge.s32.totalorder %s691_s17, 1 }
  0x39   : > { %s865_s19 = scalar_lea.hbm %s964_s1, %s412_s6  ;;  %s977_s23 = sshll.u32 %s803_s5, 3 }
  0x3a   : > { %p856_p13 = pnand %p975_p9, %p974_p7  ;;  %s166_s28 = scalar_lea.vmem [#allocation6], %s977_s23 }
  0x3b   : > { %s176_s12 = sshll.u32 %s166_s28, 4  ;;  %s163_s18 = scalar_lea.sflag [#allocation7], %s803_s5  ;;  %s177_s12 = int_to_ptr.vmem [resolvable:$true] %s176_s12 }
  0x3c   : > { %s976_s27 = scalar_select %p856_p13, 1, 0 }
  0x3d   : > { %s551_s21 = scalar_lea.hbm %s865_s19, 128  ;;  %s556_s6 = scalar_lea.hbm %s964_s1, 256 }
  0x3e   : > { %p552_p1 = scmp.ne.s32.totalorder %s865_s19, %s551_s21  ;;  %p557_p10 = scmp.lt.u32.totalorder %s865_s19, %s964_s1 }
  0x3f   : > { %p558_p12 = scmp.lt.u32.totalorder %s556_s6, %s551_s21  ;;  %p560_p0 = scmp.lt.u32.totalorder %s551_s21, %s865_s19 }
  0x40   : > { %p554_p3 = pnand %p552_p1, %p523_p11 }
  0x41   : > { %p559_p6 = por %p558_p12, %p557_p10 }
  0x42   : > { %p555_p4 = pneg %p554_p3 }
  0x43   : > { %p561_p2 = por %p560_p0, %p559_p6 }
  0x45   : > { %p562_p7 = pnand %p561_p2, %p555_p4 }
  0x47   : > { %565 = shalt.err (!%p562_p7)
}
  0x48   : > { %s566_s5 = scalar_lea.vmem %s177_s12, 128  ;;  %s694_s23 = smov [#allocation6]  }
  0x49   : > { %p567_p9 = scmp.ne.s32.totalorder %s177_s12, %s566_s5  ;;  %s571_s28 = sshll.u32 %s694_s23, 4  ;;  %s572_s28 = int_to_ptr.vmem [resolvable:$false] %s571_s28 }
  0x4a   : > { %s573_s22 = scalar_lea.vmem %s572_s28, 256  ;;  %p574_p8 = scmp.lt.s32.totalorder %s177_s12, %s572_s28 }
  0x4b   : > { %p569_p1 = pnand %p567_p9, %p523_p11  ;;  %p575_p13 = scmp.lt.s32.totalorder %s573_s22, %s566_s5 }
  0x4d   : > { %p570_p3 = pneg %p569_p1  ;;  %p576_p10 = por %p575_p13, %p574_p8 }
  0x4f   : > { %p577_p12 = pnand %p576_p10, %p570_p3 }
  0x51   : > { %580 = shalt.err (!%p577_p12)
}
  0x52   : > { %434 = dma.hbm_to_vmem [thread:$0]  (!%p818_p5), %s865_s19, 128, %s177_s12, %s163_s18  }
  0x53   : > { %p978_p4 = scmp.ne.s32.totalorder %s976_s27, 0 }
  0x54   : > { %s187_s21 = sand.u32 (!%p978_p4), 1, %s675_s13   ;;  %p979_p11 = scmp.ne.s32.totalorder (!%p978_p4), %s970_s25, 0 }
  0x55   : > { %185 = sbr.rel (%p978_p4) target bundleno = 179 (0xb3), region = 28  ;;  %s416_s26 = sshll.u32 (!%p978_p4), %s187_s21, 3 }
  0x56   : > { %s188_s6 = scalar_lea.sflag (!%p978_p4), [#allocation4], %s187_s21  ;;  %s191_s7 = scalar_lea.vmem (!%p978_p4), [#allocation3], %s416_s26 }
  0x5c   : > { %646 = dma.done.wait (%p979_p11), %s188_s6, 128  }
  0x5d   : > { %648 = vsyncadd (%p979_p11), %s188_s6, 4294967168  ;;  %s197_s8 = scalar_lea.sflag [#allocation7], %s187_s21  ;;  %s200_s5 = scalar_lea.vmem [#allocation6], %s416_s26 }
  0x5e   : > { %650 = dma.done.wait (%p979_p11), %s197_s8, 128  }
  0x5f   : > { %652 = vsyncadd (%p979_p11), %s197_s8, 4294967168  ;;  %v236_v0 = vld [vmem:[%s191_s7] sm:$0xff]  ;;  %v237_v7 = vld [vmem:[%s200_s5] sm:$0xff]  ;;  %v276_v20 = vlaneseq  ;;  %s418_s25 = sshll.u32 %s683_s15, 3  ;;  %s223_s24 = sand.u32 1, %s663_s10  }
  0x60   : > { %v238_v1 = vand.u32 2147483647, %v236_v0  ;;  %vm257_vm0 = vcmp.ge.f32.partialorder %v236_v0, 0.0  ;;  %v242_v16 = vmax.f32 %v236_v0, 0.0  ;;  %v243_v17 = vmul.f32 %v237_v7, %v236_v0  ;;  %s224_s27 = scalar_lea.vmem [#allocation8], %s223_s24  ;;  %s419_s12 = sshll.u32 %s683_s15, 4 }
  0x61   : > { %v260_v22 = vmul.f32 -0.5, %v237_v7  ;;  %v277_v24 = vshrl.u32 %v276_v20, 7  ;;  %v278_v27 = vstv %s418_s25  ;;  %s310_s19 = sshll.u32 %s224_s27, 4  ;;  %s908_s28 = scalar_lea.hbm %s965_s2, %s419_s12  ;;  %s903_s19 = int_to_ptr.vmem [resolvable:$true] %s310_s19 }
  0x62   : > { %v239_v2 = vsub.f32 0.0, %v238_v1  ;;  %v244_v21 = vsub.f32 %v242_v16, %v243_v17  ;;  %s298_s22 = scalar_lea.sflag [#allocation5], %s223_s24  ;;  %s581_s21 = scalar_lea.vmem %s903_s19, 16 }
  0x63   : > { %v261_v26 = vadd.f32 0.75, %v260_v22  ;;  %v279_v31 = vadd.s32 %v278_v27, %v277_v24  ;;  %p582_p8 = scmp.ne.s32.totalorder %s903_s19, %s581_s21  ;;  %p980_p5 = scmp.ne.s32.totalorder %s971_s3, 0 }
  0x64   : > { %v240_v3 = vmul.f32 1.442695, %v239_v2  ;;  %s695_s15 = smov [#allocation8]  }
  0x65   : > { %vm280_vm4 = vcmp.lt.s32.totalorder %v279_v31, 16  ;;  %p583_p13 = pnand %p582_p8, %p980_p5  ;;  %s585_s26 = sshll.u32 %s695_s15, 4  ;;  %s586_s26 = int_to_ptr.vmem [resolvable:$false] %s585_s26 }
  0x66   : > { %513 = vpow2.f32 %v240_v3  ;;  %s587_s6 = scalar_lea.vmem %s586_s26, 32  ;;  %p588_p0 = scmp.lt.s32.totalorder %s903_s19, %s586_s26 }
  0x67   : > { %p584_p6 = pneg %p583_p13  ;;  %p589_p2 = scmp.lt.s32.totalorder %s587_s6, %s581_s21 }
  0x69   : > { %p590_p7 = por %p589_p2, %p588_p0 }
  0x6b   : > { %p591_p9 = pnand %p590_p7, %p584_p6 }
  0x70   : > { %v514_v4 = vpop.eup %513 }
  0x71   : > { %v245_v5 = vadd.f32 1.0, %v514_v4  ;;  %v248_v9 = vmul.f32 -0.5, %v514_v4  ;;  %v251_v15 = vand.u32 2147483647, %v514_v4 }
  0x73   : > { %515 = vrcp.f32 %v245_v5  ;;  %v249_v12 = vadd.f32 1.0, %v248_v9  ;;  %vm252_vm1 = vcmp.lt.f32.partialorder %v251_v15, 0.0004427343 }
  0x74   : > { %517 = vlog2.f32 %v245_v5 }
  0x75   : > { %v250_v19 = vmul.f32 %v514_v4, %v249_v12 }
  0x7d   : > { %v516_v6 = vpop.eup %515 }
  0x7e   : > { %v258_v8 = vmul.f32 %v516_v6, %v514_v4  ;;  %v518_v14 = vpop.eup %517 }
  0x7f   : > { %v247_v18 = vmul.f32 0.6931472, %v518_v14 }
  0x80   : > { %v259_v10 = vsel %vm257_vm0, %v516_v6, %v258_v8 }
  0x81   : > { %v262_v11 = vsub.f32 %v237_v7, %v259_v10  ;;  %v253_v23 = vsel %vm252_vm1, %v250_v19, %v247_v18 }
  0x82   : > { %v254_v25 = vadd.f32 %v253_v23, %v244_v21 }
  0x83   : > { %v263_v13 = vand.u32 2147483647, %v262_v11 }
  0x84   : > { %v272_v33 = vmul.f32 %v261_v26, %v254_v25 }
  0x85   : > { %519 = vrsqrt.f32 %v263_v13  ;;  %vm266_vm2 = vcmp.eq.f32.partialorder %v263_v13, inf  ;;  %v269_v29 = vand.u32 2147483648, %v263_v13  ;;  %vm268_vm3 = vcmp.eq.f32.partialorder %v263_v13, 0.0 }
  0x8f   : > { %v520_v28 = vpop.eup %519 }
  0x90   : > { %v265_v30 = vmul.f32 %v520_v28, %v263_v13 }
  0x92   : > { %v267_v32 = vsel %vm266_vm2, %v263_v13, %v265_v30 }
  0x93   : > { %v270_v34 = vsel %vm268_vm3, %v269_v29, %v267_v32 }
  0x94   : > { %v271_v35 = vmul.f32 %v270_v34, %v263_v13 }
  0x96   : > { %v273_v36 = vmul.f32 %v272_v33, %v271_v35 }
  0x98   : > { %v281_v37 = vsel %vm280_vm4, %v273_v36, 0.0 }
  0x99   : > { %v290_v38 = vrot.slane %v281_v37, 4 }
  0x9b   : > { %v291_v39 = vadd.f32 %v290_v38, %v281_v37 }
  0x9d   : > { %v292_v40 = vrot.slane %v291_v39, 2 }
  0x9f   : > { %v293_v41 = vadd.f32 %v292_v40, %v291_v39 }
  0xa1   : > { %v294_v42 = vrot.slane %v293_v41, 1 }
  0xa3   : > { %v295_v43 = vadd.f32 %v294_v42, %v293_v41 }
  0xa5   : > { %296 = vst [vmem:[%s224_s27] sm:$0x1] %v295_v43 }
  0xa6   : > { %594 = shalt.err (!%p591_p9)
}
  0xa7   : > { %s595_s7 = scalar_lea.hbm %s908_s28, 16  ;;  %s599_s25 = scalar_lea.hbm %s965_s2, 32 }
  0xa8   : > { %p596_p1 = scmp.ne.s32.totalorder %s908_s28, %s595_s7  ;;  %p600_p12 = scmp.lt.u32.totalorder %s908_s28, %s965_s2 }
  0xa9   : > { %p601_p4 = scmp.lt.u32.totalorder %s599_s25, %s595_s7  ;;  %p603_p8 = scmp.lt.u32.totalorder %s595_s7, %s908_s28 }
  0xaa   : > { %p597_p3 = pnand %p596_p1, %p980_p5 }
  0xab   : > { %p602_p11 = por %p601_p4, %p600_p12 }
  0xac   : > { %p598_p10 = pneg %p597_p3 }
  0xad   : > { %p604_p13 = por %p603_p8, %p602_p11 }
  0xaf   : > { %p605_p6 = pnand %p604_p13, %p598_p10 }
  0xb1   : > { %608 = shalt.err (!%p605_p6)
}
  0xb2   : > { %426 = dma.vmem_to_hbm [thread:$0]  (%p980_p5), %s903_s19, 16, %s908_s28, %s298_s22  }
  0xb3 PF: > { %s322_s12 = sand.u32 1, %s659_s9   ;;  %p981_p0 = scmp.ne.s32.totalorder %s972_s4, 0 }
  0xb4   : > { %p982_p2 = scmp.ge.s32.totalorder %s691_s17, 2  ;;  %s323_s18 = scalar_lea.sflag [#allocation5], %s322_s12 }
  0xb6   : > { %p436_p7 = pnand %p982_p2, %p981_p0 }
  0xb8   : > { %654 = dma.done.wait (!%p436_p7), %s323_s18, 16  }
  0xb9   : > { %656 = vsyncadd (!%p436_p7), %s323_s18, 4294967280  ;;  %s21_s17 = sadd.s32 1, %s691_s17   ;;  %s983_s9 = smov %s663_s10 }
  0xba   : > { %p18_p9 = scmp.ge.s32.totalorder %s21_s17, 4   ;;  %s984_s10 = smov %s667_s11 }
  0xbb   : > { %s985_s11 = smov %s783_s29  ;;  %s986_s12 = smov %s675_s13 }
  0xbc   : > { %s987_s13 = smov %s679_s14  ;;  %s988_s14 = smov %s786_s30 }
  0xbd   : > { %s989_s15 = smov %s687_s16  ;;  %s990_s16 = smov %s992_s20 }
  0xbe   :  { %20 = sbr.rel (!%p18_p9) target bundleno = 10 (0xa), region = 94 }
  0xc5   :  { %327 = vsyncpa [#allocation4], 1 }
  0xc6   :  { %329 = vsyncpa [#allocation4 + $0x1], 1 }
  0xc7   :  { %330 = vsyncpa [#allocation7], 1 }
  0xc8   :  { %332 = vsyncpa [#allocation7 + $0x1], 1 }
  0xc9   :  { %333 = vsyncpa [#allocation5], 1 }
  0xca   :  { %335 = vsyncpa [#allocation5 + $0x1], 1 }

</bundles_post_ra>
